<compile_context>
chip_gen: v5e
topology: v5e:2x2
jax: 0.10.0
libtpu: 0.0.40
codegen_flags: <defaults>
</compile_context>

<pallas_src>
import functools

import jax
import jax.numpy as jnp
from jax.experimental import pallas as pl
from jax.experimental.pallas import tpu as pltpu

LANE = 128


def mlp_kernel(x_ref, w1_ref, b1_ref, w2_ref, b2_ref, w3_ref, b3_ref, o_ref):
    # x arrives as f32 (single HBM pass); cast to bf16 on the VPU right before the dot.
    x = x_ref[...].astype(jnp.bfloat16)
    # fc1: bf16 x bf16 -> f32 accumulation on the MXU; bias + ReLU in f32 (VPU).
    h1 = jnp.dot(x, w1_ref[...], preferred_element_type=jnp.float32)
    h1 = jnp.maximum(h1 + b1_ref[...], 0.0)
    # fc2 (h2 zero-padded to 128 lanes -> full-tile layout, no masked VPU/store work)
    h2 = jnp.dot(h1.astype(jnp.bfloat16), w2_ref[...],
                 preferred_element_type=jnp.float32)
    h2 = jnp.maximum(h2 + b2_ref[...], 0.0)
    # fc3 (logits; output columns zero-padded to 128 lanes -> lane-dense full vst)
    out = jnp.dot(h2.astype(jnp.bfloat16), w3_ref[...],
                  preferred_element_type=jnp.float32)
    o_ref[...] = (out + b3_ref[...]).astype(o_ref.dtype)


def prepare_mlp_params(w1, b1, w2, b2, w3, b3):
    """One-time conversion: bf16 weights, f32 biases, h2 and out dims padded to 128.

    Done once at init so each forward does not re-read/re-write the weights in a
    separate XLA convert/pad pass. Zero padding keeps the math identical.
    """
    h2 = w2.shape[1]
    out_dim = w3.shape[1]
    h2p = pl.cdiv(h2, LANE) * LANE
    outp = pl.cdiv(out_dim, LANE) * LANE

    w1b = w1.astype(jnp.bfloat16)
    b1f = b1.reshape(1, -1).astype(jnp.float32)
    w2b = jnp.pad(w2, ((0, 0), (0, h2p - h2))).astype(jnp.bfloat16)
    b2f = jnp.pad(b2.reshape(1, -1), ((0, 0), (0, h2p - h2))).astype(jnp.float32)
    w3b = jnp.pad(w3, ((0, h2p - h2), (0, outp - out_dim))).astype(jnp.bfloat16)
    b3f = jnp.pad(b3.reshape(1, -1), ((0, 0), (0, outp - out_dim))).astype(jnp.float32)
    params = (w1b, b1f, w2b, b2f, w3b, b3f)
    return params, out_dim


@functools.partial(jax.jit, static_argnames=("out_dim", "block_b"))
def mlp_forward(x, params, *, out_dim, block_b=128):
    """Fused MLP forward. block_b guidance: 128 keeps >=2 grid steps per TC on v7x at
    B=512; raise to 512-1024 for large batches (VMEM is not a constraint here)."""
    w1b, b1f, w2b, b2f, w3b, b3f = params
    B, in_dim = x.shape
    h1_dim = w1b.shape[1]
    h2p = w2b.shape[1]
    outp = w3b.shape[1]

    grid = (pl.cdiv(B, block_b),)       # ragged batch: Pallas masks the edge block
    const = lambda i: (0, 0)            # weights/biases resident for every batch tile
    single = pl.Buffered(1)             # grid-invariant operands: no double-buffering

    flops = 2 * B * (in_dim * h1_dim + h1_dim * h2p + h2p * outp)
    bytes_accessed = (
        x.size * x.dtype.itemsize                              # f32 x stream (dominant)
        + (w1b.size + w2b.size + w3b.size) * 2                 # bf16 weights
        + (b1f.size + b2f.size + b3f.size) * 4                 # f32 biases
        + B * outp * 4                                         # f32 padded logits
    )

    out = pl.pallas_call(
        mlp_kernel,
        out_shape=jax.ShapeDtypeStruct((B, outp), jnp.float32),
        grid_spec=pltpu.PrefetchScalarGridSpec(
            num_scalar_prefetch=0,
            grid=grid,
            in_specs=[
                pl.BlockSpec((block_b, in_dim), lambda i: (i, 0)),            # x tile
                pl.BlockSpec((in_dim, h1_dim), const, pipeline_mode=single),  # W1
                pl.BlockSpec((1, h1_dim), const, pipeline_mode=single),       # b1
                pl.BlockSpec((h1_dim, h2p), const, pipeline_mode=single),     # W2 (padded)
                pl.BlockSpec((1, h2p), const, pipeline_mode=single),          # b2 (padded)
                pl.BlockSpec((h2p, outp), const, pipeline_mode=single),       # W3 (padded)
                pl.BlockSpec((1, outp), const, pipeline_mode=single),         # b3 (padded)
            ],
            out_specs=pl.BlockSpec((block_b, outp), lambda i: (i, 0)),
        ),
        compiler_params=pltpu.CompilerParams(
            dimension_semantics=("parallel",),  # batch tiles shard across TCs on v7x
        ),
        cost_estimate=pl.CostEstimate(
            flops=flops, transcendentals=0, bytes_accessed=bytes_accessed),
    )(x, w1b, b1f, w2b, b2f, w3b, b3f)

    return out[:, :out_dim]


def init_linear_params(key, in_features, out_features):
    """Deterministic init mimicking nn.Linear default (uniform +/- 1/sqrt(fan_in))."""
    kw, kb = jax.random.split(key)
    bound = 1.0 / jnp.sqrt(in_features)
    # stored as (in, out) so the kernel does x @ W
    w = jax.random.uniform(kw, (in_features, out_features), jnp.float32, -bound, bound)
    b = jax.random.uniform(kb, (1, out_features), jnp.float32, -bound, bound)
    return w, b


if __name__ == "__main__":
    input_size = 784
    hidden_sizes = [128, 64]
    output_size = 10
    batch = 512          # with block_b=128 -> 4 grid steps -> >=2 per TC on v7x

    key = jax.random.PRNGKey(0)
    kx, k1, k2, k3 = jax.random.split(key, 4)

    x = jax.random.normal(kx, (batch, input_size), jnp.float32)
    w1, b1 = init_linear_params(k1, input_size, hidden_sizes[0])
    w2, b2 = init_linear_params(k2, hidden_sizes[0], hidden_sizes[1])
    w3, b3 = init_linear_params(k3, hidden_sizes[1], output_size)

    params, out_dim = prepare_mlp_params(w1, b1, w2, b2, w3, b3)
    params = jax.block_until_ready(params)   # one-time cost, outside the forward

    out = mlp_forward(x, params, out_dim=out_dim, block_b=128)
    out = jax.block_until_ready(out)

    # Pure-JAX reference with the same bf16-in / f32-accumulate math as the kernel.
    xb = x.astype(jnp.bfloat16)
    r1 = jnp.maximum(
        jnp.dot(xb, w1.astype(jnp.bfloat16), preferred_element_type=jnp.float32) + b1, 0.0)
    r2 = jnp.maximum(
        jnp.dot(r1.astype(jnp.bfloat16), w2.astype(jnp.bfloat16),
                preferred_element_type=jnp.float32) + b2, 0.0)
    ref = jnp.dot(r2.astype(jnp.bfloat16), w3.astype(jnp.bfloat16),
                  preferred_element_type=jnp.float32) + b3

    assert out.shape == (batch, output_size)
    assert jnp.allclose(out, ref, atol=2e-2, rtol=2e-2), float(jnp.max(jnp.abs(out - ref)))

    print("KERNEL_OK")
</pallas_src>

<mosaic_0001>
module attributes {stable_mosaic.version = 11 : i64} {
  func.func @mlp_kernel(%arg0: i32, %arg1: memref<128x784xf32, #tpu.memory_space<vmem>>, %arg2: memref<784x128xbf16, #tpu.memory_space<vmem>>, %arg3: memref<1x128xf32, #tpu.memory_space<vmem>>, %arg4: memref<128x128xbf16, #tpu.memory_space<vmem>>, %arg5: memref<1x128xf32, #tpu.memory_space<vmem>>, %arg6: memref<128x128xbf16, #tpu.memory_space<vmem>>, %arg7: memref<1x128xf32, #tpu.memory_space<vmem>>, %arg8: memref<128x128xf32, #tpu.memory_space<vmem>>) attributes {dimension_semantics = [#tpu.dimension_semantics<parallel>], iteration_bounds = array<i64: 4>, scalar_prefetch = 0 : i64, scratch_operands = 0 : i64, tpu.core_type = #tpu.core_type<tc>, window_params = [{transform_indices = @transform_0, window_bounds = array<i64: 128, 784>}, {pipeline_mode = #tpu.pipeline_mode<synchronous>, transform_indices = @transform_1, window_bounds = array<i64: 784, 128>}, {pipeline_mode = #tpu.pipeline_mode<synchronous>, transform_indices = @transform_2, window_bounds = array<i64: 1, 128>}, {pipeline_mode = #tpu.pipeline_mode<synchronous>, transform_indices = @transform_3, window_bounds = array<i64: 128, 128>}, {pipeline_mode = #tpu.pipeline_mode<synchronous>, transform_indices = @transform_4, window_bounds = array<i64: 1, 128>}, {pipeline_mode = #tpu.pipeline_mode<synchronous>, transform_indices = @transform_5, window_bounds = array<i64: 128, 128>}, {pipeline_mode = #tpu.pipeline_mode<synchronous>, transform_indices = @transform_6, window_bounds = array<i64: 1, 128>}, {transform_indices = @transform_7, window_bounds = array<i64: 128, 128>}]} {
    %c0 = arith.constant 0 : index
    %c0_0 = arith.constant 0 : index
    %0 = vector.load %arg1[%c0, %c0_0] : memref<128x784xf32, #tpu.memory_space<vmem>>, vector<128x784xf32>
    %1 = arith.truncf %0 : vector<128x784xf32> to vector<128x784xbf16>
    %c0_1 = arith.constant 0 : index
    %c0_2 = arith.constant 0 : index
    %2 = vector.load %arg2[%c0_1, %c0_2] : memref<784x128xbf16, #tpu.memory_space<vmem>>, vector<784x128xbf16>
    %cst = arith.constant dense<0.000000e+00> : vector<128x128xf32>
    %3 = tpu.matmul %1, %2, %cst {dimension_numbers = #tpu.dot_dimension_numbers<[1], [0], [0], [1], [0, 0, 1, 1], [], []>} : vector<128x784xbf16>, vector<784x128xbf16>, vector<128x128xf32> -> vector<128x128xf32>
    %c0_3 = arith.constant 0 : index
    %c0_4 = arith.constant 0 : index
    %4 = vector.load %arg3[%c0_3, %c0_4] : memref<1x128xf32, #tpu.memory_space<vmem>>, vector<1x128xf32>
    %5 = vector.broadcast %4 : vector<1x128xf32> to vector<128x128xf32>
    %6 = arith.addf %3, %5 : vector<128x128xf32>
    %cst_5 = arith.constant 0.000000e+00 : f32
    %7 = vector.broadcast %cst_5 : f32 to vector<128x128xf32>
    %8 = arith.maximumf %6, %7 : vector<128x128xf32>
    %9 = arith.truncf %8 : vector<128x128xf32> to vector<128x128xbf16>
    %c0_6 = arith.constant 0 : index
    %c0_7 = arith.constant 0 : index
    %10 = vector.load %arg4[%c0_6, %c0_7] : memref<128x128xbf16, #tpu.memory_space<vmem>>, vector<128x128xbf16>
    %cst_8 = arith.constant dense<0.000000e+00> : vector<128x128xf32>
    %11 = tpu.matmul %9, %10, %cst_8 {dimension_numbers = #tpu.dot_dimension_numbers<[1], [0], [0], [1], [0, 0, 1, 1], [], []>} : vector<128x128xbf16>, vector<128x128xbf16>, vector<128x128xf32> -> vector<128x128xf32>
    %c0_9 = arith.constant 0 : index
    %c0_10 = arith.constant 0 : index
    %12 = vector.load %arg5[%c0_9, %c0_10] : memref<1x128xf32, #tpu.memory_space<vmem>>, vector<1x128xf32>
    %13 = vector.broadcast %12 : vector<1x128xf32> to vector<128x128xf32>
    %14 = arith.addf %11, %13 : vector<128x128xf32>
    %cst_11 = arith.constant 0.000000e+00 : f32
    %15 = vector.broadcast %cst_11 : f32 to vector<128x128xf32>
    %16 = arith.maximumf %14, %15 : vector<128x128xf32>
    %17 = arith.truncf %16 : vector<128x128xf32> to vector<128x128xbf16>
    %c0_12 = arith.constant 0 : index
    %c0_13 = arith.constant 0 : index
    %18 = vector.load %arg6[%c0_12, %c0_13] : memref<128x128xbf16, #tpu.memory_space<vmem>>, vector<128x128xbf16>
    %cst_14 = arith.constant dense<0.000000e+00> : vector<128x128xf32>
    %19 = tpu.matmul %17, %18, %cst_14 {dimension_numbers = #tpu.dot_dimension_numbers<[1], [0], [0], [1], [0, 0, 1, 1], [], []>} : vector<128x128xbf16>, vector<128x128xbf16>, vector<128x128xf32> -> vector<128x128xf32>
    %c0_15 = arith.constant 0 : index
    %c0_16 = arith.constant 0 : index
    %20 = vector.load %arg7[%c0_15, %c0_16] : memref<1x128xf32, #tpu.memory_space<vmem>>, vector<1x128xf32>
    %21 = vector.broadcast %20 : vector<1x128xf32> to vector<128x128xf32>
    %22 = arith.addf %19, %21 : vector<128x128xf32>
    %c0_17 = arith.constant 0 : index
    %c0_18 = arith.constant 0 : index
    %23 = vector.load %arg8[%c0_17, %c0_18] : memref<128x128xf32, #tpu.memory_space<vmem>>, vector<128x128xf32>
    tpu.vector_store %arg8[%c0_17, %c0_18], %22 {strides = array<i32>} : memref<128x128xf32, #tpu.memory_space<vmem>>, vector<128x128xf32>,
    return
  }
  func.func @transform_0(%arg0: i32) -> (i32, i32) {
    %c0_i32 = arith.constant 0 : i32
    %c0_i32_0 = arith.constant 0 : i32
    return %arg0, %c0_i32 : i32, i32
  }
  func.func @transform_1(%arg0: i32) -> (i32, i32) {
    %c0_i32 = arith.constant 0 : i32
    %c0_i32_0 = arith.constant 0 : i32
    %c0_i32_1 = arith.constant 0 : i32
    return %c0_i32, %c0_i32_0 : i32, i32
  }
  func.func @transform_2(%arg0: i32) -> (i32, i32) {
    %c0_i32 = arith.constant 0 : i32
    %c0_i32_0 = arith.constant 0 : i32
    %c0_i32_1 = arith.constant 0 : i32
    return %c0_i32, %c0_i32_0 : i32, i32
  }
  func.func @transform_3(%arg0: i32) -> (i32, i32) {
    %c0_i32 = arith.constant 0 : i32
    %c0_i32_0 = arith.constant 0 : i32
    %c0_i32_1 = arith.constant 0 : i32
    return %c0_i32, %c0_i32_0 : i32, i32
  }
  func.func @transform_4(%arg0: i32) -> (i32, i32) {
    %c0_i32 = arith.constant 0 : i32
    %c0_i32_0 = arith.constant 0 : i32
    %c0_i32_1 = arith.constant 0 : i32
    return %c0_i32, %c0_i32_0 : i32, i32
  }
  func.func @transform_5(%arg0: i32) -> (i32, i32) {
    %c0_i32 = arith.constant 0 : i32
    %c0_i32_0 = arith.constant 0 : i32
    %c0_i32_1 = arith.constant 0 : i32
    return %c0_i32, %c0_i32_0 : i32, i32
  }
  func.func @transform_6(%arg0: i32) -> (i32, i32) {
    %c0_i32 = arith.constant 0 : i32
    %c0_i32_0 = arith.constant 0 : i32
    %c0_i32_1 = arith.constant 0 : i32
    return %c0_i32, %c0_i32_0 : i32, i32
  }
  func.func @transform_7(%arg0: i32) -> (i32, i32) {
    %c0_i32 = arith.constant 0 : i32
    %c0_i32_0 = arith.constant 0 : i32
    return %arg0, %c0_i32 : i32, i32
  }
}

</mosaic_0001>

<bundles_post_ra>
// kernel: mlp_forward.1
= control target key start
LH: loop header
LB: loop body
LE: loop exit
PB: predicated region body
PF: predicated region fallthrough
CT: control target
= control target key end

     0   :  { %s2000_s24 = smov 0   ;;  %s2464_s0 = inlined_call_operand.vmem [shape: f32[512,784], index: 0, kind: input, shape index: {}]   ;;  %s2465_s1 = inlined_call_operand.vmem [shape: bf16[784,128], index: 1, kind: input, shape index: {}]   ;;  %s2466_s2 = inlined_call_operand.vmem [shape: f32[1,128], index: 2, kind: input, shape index: {}]   ;;  %s2467_s3 = inlined_call_operand.vmem [shape: bf16[128,128], index: 3, kind: input, shape index: {}]   ;;  %s2468_s4 = inlined_call_operand.vmem [shape: f32[1,128], index: 4, kind: input, shape index: {}]   ;;  %s2469_s5 = inlined_call_operand.vmem [shape: bf16[128,128], index: 5, kind: input, shape index: {}]   ;;  %s2470_s6 = inlined_call_operand.vmem [shape: f32[1,128], index: 6, kind: input, shape index: {}]   ;;  %s2471_s7 = inlined_call_operand.vmem [shape: f32[512,128], index: 7, kind: output, shape index: {}]  }
   0x1 LB: > { %s1572_s25 = sadd.s32 4294967295, %s1958_s24   ;;  %p1576_p0 = scmp.ge.s32.totalorder %s1958_s24, 1  ;;  %s1958_s24 = sphi %s2000_s24, %s17_s24  }
   0x2   : > { %p239_p1 = scmp.lt.s32.totalorder %s1958_s24, 5 }
   0x4   : > { %p240_p2 = pnand %p1576_p0, %p239_p1 }
   0x5   : > { %s1577_s9 = sshll.u32 (!%p240_p2), %s1572_s25, 4 }
   0x6   : > { %243 = sbr.rel (%p240_p2) target bundleno = 744 (0x2e8), region = 48  ;;  %p273_p3 = scmp.lt.s32.totalorder (!%p240_p2), %s1577_s9, 63 }
   0xb   : > { %v1858_v0 = vld [vmem:[%s2465_s1 + $0x38] sm:$0xff]  ;;  %v1857_v1 = vld [vmem:[%s2465_s1 + $0x30] sm:$0xff]  ;;  %v1856_v2 = vld [vmem:[%s2465_s1 + $0x28] sm:$0xff]  ;;  %s2473_s9 = smov (!%p273_p3, %s1577_s9), 63  ;;  %vm850_vm0 = vcmask 130048  }
   0xc   : > { %1916 = vmatpush.bf16.msra.mxu1 %v1858_v0  ;;  %1917 = vmatpush.bf16.msra.mxu2 %v1858_v0  ;;  %v1855_v3 = vld [vmem:[%s2465_s1 + $0x20] sm:$0xff]  ;;  %v1854_v4 = vld [vmem:[%s2465_s1 + $0x18] sm:$0xff]  ;;  %v1853_v5 = vld [vmem:[%s2465_s1 + $0x10] sm:$0xff]  ;;  %s1940_s16 = smul.u32 56, %s2473_s9  ;;  %s1580_s20 = sshll.u32 %s2473_s9, 3 }
   0xd   : > { %1918 = vmatpush.bf16.msra.mxu3 %v1858_v0  ;;  %875 = vmatpush.bf16.msra.mxu0 %v1858_v0  ;;  %v1852_v6 = vld [vmem:[%s2465_s1 + $0x8] sm:$0xff]  ;;  %v1851_v7 = vld [vmem:[%s2465_s1] sm:$0xff]  ;;  %v1874_v12 = vld [vmem:[%s2465_s1 + $0xb8] sm:$0xff]  ;;  %s2443_s26 = scalar_lea.vmem %s2471_s7, %s1580_s20 }
   0xe   : > { %s2035_s21 = scalar_lea.vmem %s2464_s0, %s1940_s16  ;;  %v1866_v15 = vld [vmem:[%s2465_s1 + $0x78] sm:$0xff]  ;;  %v1873_v22 = vld [vmem:[%s2465_s1 + $0xb0] sm:$0xff]  ;;  %v1872_v27 = vld [vmem:[%s2465_s1 + $0xa8] sm:$0xff] }
   0xf   : > { %v314_v8 = vld [vmem:[%s2035_s21 + $0xe0] sm:$0xff]  ;;  %v321_v9 = vld [vmem:[%s2035_s21 + $0x118] sm:$0xff]  ;;  %v1865_v24 = vld [vmem:[%s2465_s1 + $0x70] sm:$0xff] }
  0x10   : > { %1919 = vmatpush.bf16.msra.mxu1 %v1857_v1  ;;  %1920 = vmatpush.bf16.msra.mxu2 %v1857_v1  ;;  %v342_v10 = vld [vmem:[%s2035_s21 + $0x1c0] sm:$0xff]  ;;  %v349_v11 = vld [vmem:[%s2035_s21 + $0x1f8] sm:$0xff]  ;;  %v412_v17 = vpack.c.bf16 %v321_v9, %v314_v8  ;;  %v1881_v25 = vld [vmem:[%s2465_s1 + $0xf0] sm:$0xff] }
  0x11   : > { %1921 = vmatpush.bf16.msra.mxu3 %v1857_v1  ;;  %876 = vmatpush.bf16.msra.mxu0 %v1857_v1  ;;  %v370_v13 = vld [vmem:[%s2035_s21 + $0x2a0] sm:$0xff]  ;;  %v377_v14 = vld [vmem:[%s2035_s21 + $0x2d8] sm:$0xff]  ;;  %v426_v18 = vpack.c.bf16 %v349_v11, %v342_v10  ;;  %v1889_v28 = vld [vmem:[%s2465_s1 + $0x130] sm:$0xff] }
  0x12   : > { %v1882_v16 = vld [vmem:[%s2465_s1 + $0xf8] sm:$0xff]  ;;  %v440_v19 = vpack.c.bf16 %v377_v14, %v370_v13  ;;  %v286_v20 = vld [vmem:[%s2035_s21] sm:$0xff]  ;;  %v1864_v29 = vld [vmem:[%s2465_s1 + $0x68] sm:$0xff] }
  0x13   : > { %v293_v21 = vld [vmem:[%s2035_s21 + $0x38] sm:$0xff]  ;;  %v1880_v30 = vld [vmem:[%s2465_s1 + $0xe8] sm:$0xff]  ;;  %v1871_v31 = vld [vmem:[%s2465_s1 + $0xa0] sm:$0xff] }
  0x14   : > { %1922 = vmatpush.bf16.msra.mxu1 %v1856_v2  ;;  %1923 = vmatpush.bf16.msra.mxu2 %v1856_v2  ;;  %v1890_v23 = vld [vmem:[%s2465_s1 + $0x138] sm:$0xff]  ;;  %v398_v26 = vpack.c.bf16 %v293_v21, %v286_v20  ;;  %v1888_v32 = vld [vmem:[%s2465_s1 + $0x128] sm:$0xff]  ;;  %v1863_v33 = vld [vmem:[%s2465_s1 + $0x60] sm:$0xff] }
  0x15   : > { %1924 = vmatpush.bf16.msra.mxu3 %v1856_v2  ;;  %877 = vmatpush.bf16.msra.mxu0 %v1856_v2  ;;  %v1879_v34 = vld [vmem:[%s2465_s1 + $0xe0] sm:$0xff]  ;;  %v328_v35 = vld [vmem:[%s2035_s21 + $0x150] sm:$0xff]  ;;  %v335_v36 = vld [vmem:[%s2035_s21 + $0x188] sm:$0xff] }
  0x16   : > { %v356_v37 = vld [vmem:[%s2035_s21 + $0x230] sm:$0xff]  ;;  %v363_v38 = vld [vmem:[%s2035_s21 + $0x268] sm:$0xff]  ;;  %v1870_v39 = vld [vmem:[%s2465_s1 + $0x98] sm:$0xff]  ;;  %v419_v45 = vpack.c.bf16 %v335_v36, %v328_v35 }
  0x17   : > { %v384_v40 = vld [vmem:[%s2035_s21 + $0x310] sm:$0xff]  ;;  %v391_v41 = vld [vmem:[%s2035_s21 + $0x348] sm:$0xff]  ;;  %v1887_v42 = vld [vmem:[%s2465_s1 + $0x120] sm:$0xff]  ;;  %v433_v46 = vpack.c.bf16 %v363_v38, %v356_v37 }
  0x18   : > { %1925 = vmatpush.bf16.msra.mxu1 %v1855_v3  ;;  %1926 = vmatpush.bf16.msra.mxu2 %v1855_v3  ;;  %v1862_v43 = vld [vmem:[%s2465_s1 + $0x58] sm:$0xff]  ;;  %v447_v47 = vpack.c.bf16 %v391_v41, %v384_v40  ;;  %v300_v48 = vld [vmem:[%s2035_s21 + $0x70] sm:$0xff]  ;;  %v307_v49 = vld [vmem:[%s2035_s21 + $0xa8] sm:$0xff] }
  0x19   : > { %1927 = vmatpush.bf16.msra.mxu3 %v1855_v3  ;;  %878 = vmatpush.bf16.msra.mxu0 %v1855_v3  ;;  %v1878_v44 = vld [vmem:[%s2465_s1 + $0xd8] sm:$0xff]  ;;  %v1869_v50 = vld [vmem:[%s2465_s1 + $0x90] sm:$0xff]  ;;  %v405_v54 = vpack.c.bf16 %v307_v49, %v300_v48  ;;  %v1868_v55 = vld [vmem:[%s2465_s1 + $0x88] sm:$0xff] }
  0x1a   : > { %v1886_v51 = vld [vmem:[%s2465_s1 + $0x118] sm:$0xff]  ;;  %v1861_v52 = vld [vmem:[%s2465_s1 + $0x50] sm:$0xff]  ;;  %v1860_v57 = vld [vmem:[%s2465_s1 + $0x48] sm:$0xff] }
  0x1b   : > { %v1877_v53 = vld [vmem:[%s2465_s1 + $0xd0] sm:$0xff]  ;;  %v1876_v58 = vld [vmem:[%s2465_s1 + $0xc8] sm:$0xff]  ;;  %v1867_v59 = vld [vmem:[%s2465_s1 + $0x80] sm:$0xff] }
  0x1c   : > { %1928 = vmatpush.bf16.msra.mxu1 %v1854_v4  ;;  %1929 = vmatpush.bf16.msra.mxu2 %v1854_v4  ;;  %v1885_v56 = vld [vmem:[%s2465_s1 + $0x110] sm:$0xff]  ;;  %v1884_v60 = vld [vmem:[%s2465_s1 + $0x108] sm:$0xff]  ;;  %v1859_v61 = vld [vmem:[%s2465_s1 + $0x40] sm:$0xff] }
  0x1d   : > { %1930 = vmatpush.bf16.msra.mxu3 %v1854_v4  ;;  %879 = vmatpush.bf16.msra.mxu0 %v1854_v4  ;;  %v1875_v62 = vld [vmem:[%s2465_s1 + $0xc0] sm:$0xff]  ;;  %v287_v63 = vld [vmem:[%s2035_s21 + $0x8] sm:$0xff]  ;;  %v1898_v1 = vld [vmem:[%s2465_s1 + $0x178] sm:$0xff] }
  0x1e   : > { %v1899_v0 = vld [vmem:[%s2465_s1 + $0x180] sm:$0xff]  ;;  %v288_v3 = vld [vmem:[%s2035_s21 + $0x10] sm:$0xff]  ;;  %v295_v4 = vld [vmem:[%s2035_s21 + $0x48] sm:$0xff] }
  0x1f   : > { %v294_v2 = vld [vmem:[%s2035_s21 + $0x40] sm:$0xff]  ;;  %v400_v9 = vpack.c.bf16 %v295_v4, %v288_v3  ;;  %v1897_v13 = vld [vmem:[%s2465_s1 + $0x170] sm:$0xff]  ;;  %v303_v20 = vld [vmem:[%s2035_s21 + $0x88] sm:$0xff] }
  0x20   : > { %1931 = vmatpush.bf16.msra.mxu1 %v1853_v5  ;;  %1932 = vmatpush.bf16.msra.mxu2 %v1853_v5  ;;  %v399_v8 = vpack.c.bf16 %v294_v2, %v287_v63  ;;  %v290_v11 = vld [vmem:[%s2035_s21 + $0x20] sm:$0xff]  ;;  %v1894_v41 = vld [vmem:[%s2465_s1 + $0x158] sm:$0xff]  ;;  %v1892_v3 = vld [vmem:[%s2465_s1 + $0x148] sm:$0xff] }
  0x21   : > { %1933 = vmatpush.bf16.msra.mxu3 %v1853_v5  ;;  %880 = vmatpush.bf16.msra.mxu0 %v1853_v5  ;;  %v289_v5 = vld [vmem:[%s2035_s21 + $0x18] sm:$0xff]  ;;  %v310_v21 = vld [vmem:[%s2035_s21 + $0xc0] sm:$0xff] }
  0x22   : > { %v318_v38 = vld [vmem:[%s2035_s21 + $0x100] sm:$0xff]  ;;  %v357_v4 = vld [vmem:[%s2035_s21 + $0x238] sm:$0xff] }
  0x24   : > { %1934 = vmatpush.bf16.msra.mxu1 %v1852_v6  ;;  %1935 = vmatpush.bf16.msra.mxu2 %v1852_v6 }
  0x25   : > { %1936 = vmatpush.bf16.msra.mxu3 %v1852_v6  ;;  %881 = vmatpush.bf16.msra.mxu0 %v1852_v6  ;;  %v296_v6 = vld [vmem:[%s2035_s21 + $0x50] sm:$0xff] }
  0x26   : > { %v401_v10 = vpack.c.bf16 %v296_v6, %v289_v5  ;;  %v364_v5 = vld [vmem:[%s2035_s21 + $0x270] sm:$0xff]  ;;  %v358_v6 = vld [vmem:[%s2035_s21 + $0x240] sm:$0xff] }
  0x28   : > { %1937 = vmatpush.bf16.msra.mxu1 %v1851_v7  ;;  %1938 = vmatpush.bf16.msra.mxu2 %v1851_v7 }
  0x29   : > { %1939 = vmatpush.bf16.msra.mxu3 %v1851_v7  ;;  %882 = vmatpush.bf16.msra.mxu0 %v1851_v7  ;;  %v1883_v7 = vld [vmem:[%s2465_s1 + $0x100] sm:$0xff] }
  0x2b   : > { %893 = vmatmul.bf16.vlgmr.msra.gmra.mxu1 %v412_v17  ;;  %903 = vmatmul.bf16.vlgmr.msra.gmra.mxu2 %v426_v18  ;;  %v308_v17 = vld [vmem:[%s2035_s21 + $0xb0] sm:$0xff]  ;;  %v302_v18 = vld [vmem:[%s2035_s21 + $0x80] sm:$0xff] }
  0x2c   : > { %973 = vmatpush.bf16.msrb.mxu2 %v1874_v12  ;;  %924 = vmatpush.bf16.msrb.mxu1 %v1866_v15  ;;  %v297_v12 = vld [vmem:[%s2035_s21 + $0x58] sm:$0xff]  ;;  %v1896_v15 = vld [vmem:[%s2465_s1 + $0x168] sm:$0xff] }
  0x2d   : > { %1022 = vmatpush.bf16.msrb.mxu3 %v1882_v16  ;;  %1071 = vmatpush.bf16.msrb.mxu0 %v1890_v23  ;;  %v402_v14 = vpack.c.bf16 %v297_v12, %v290_v11  ;;  %v301_v16 = vld [vmem:[%s2035_s21 + $0x78] sm:$0xff] }
  0x2e   : > { %913 = vmatmul.bf16.vlgmr.msra.gmra.mxu3 %v440_v19  ;;  %883 = vmatmul.bf16.vlgmr.msra.gmra.mxu0 %v398_v26  ;;  %v309_v19 = vld [vmem:[%s2035_s21 + $0xb8] sm:$0xff]  ;;  %v311_v26 = vld [vmem:[%s2035_s21 + $0xc8] sm:$0xff] }
  0x2f   : > { %v407_v23 = vpack.c.bf16 %v309_v19, %v302_v18  ;;  %v378_v18 = vld [vmem:[%s2035_s21 + $0x2e0] sm:$0xff]  ;;  %v372_v19 = vld [vmem:[%s2035_s21 + $0x2b0] sm:$0xff] }
  0x30   : > { %974 = vmatpush.bf16.msrb.mxu2 %v1873_v22  ;;  %925 = vmatpush.bf16.msrb.mxu1 %v1865_v24  ;;  %v406_v22 = vpack.c.bf16 %v308_v17, %v301_v16  ;;  %v408_v24 = vpack.c.bf16 %v310_v21, %v303_v20  ;;  %v1891_v16 = vld [vmem:[%s2465_s1 + $0x140] sm:$0xff]  ;;  %v371_v17 = vld [vmem:[%s2035_s21 + $0x2a8] sm:$0xff]  ;;  %v373_v21 = vld [vmem:[%s2035_s21 + $0x2b8] sm:$0xff] }
  0x31   : > { %1023 = vmatpush.bf16.msrb.mxu3 %v1881_v25  ;;  %1072 = vmatpush.bf16.msrb.mxu0 %v1889_v28  ;;  %v304_v25 = vld [vmem:[%s2035_s21 + $0x90] sm:$0xff]  ;;  %v1895_v28 = vld [vmem:[%s2465_s1 + $0x160] sm:$0xff]  ;;  %v379_v20 = vld [vmem:[%s2035_s21 + $0x2e8] sm:$0xff] }
  0x34   : > { %975 = vmatpush.bf16.msrb.mxu2 %v1872_v27  ;;  %926 = vmatpush.bf16.msrb.mxu1 %v1864_v29  ;;  %v409_v27 = vpack.c.bf16 %v311_v26, %v304_v25  ;;  %v315_v29 = vld [vmem:[%s2035_s21 + $0xe8] sm:$0xff] }
  0x35   : > { %1024 = vmatpush.bf16.msrb.mxu3 %v1880_v30  ;;  %1073 = vmatpush.bf16.msrb.mxu0 %v1888_v32  ;;  %v322_v30 = vld [vmem:[%s2035_s21 + $0x120] sm:$0xff]  ;;  %v323_v32 = vld [vmem:[%s2035_s21 + $0x128] sm:$0xff] }
  0x36   : > { %v413_v35 = vpack.c.bf16 %v322_v30, %v315_v29  ;;  %v2240_v30 = vld [vmem:[%s2466_s2] ss:$0 sm:$0xff] }
  0x38   : > { %976 = vmatpush.bf16.msrb.mxu2 %v1871_v31  ;;  %927 = vmatpush.bf16.msrb.mxu1 %v1863_v33  ;;  %v316_v31 = vld [vmem:[%s2035_s21 + $0xf0] sm:$0xff]  ;;  %v317_v33 = vld [vmem:[%s2035_s21 + $0xf8] sm:$0xff] }
  0x39   : > { %1025 = vmatpush.bf16.msrb.mxu3 %v1879_v34  ;;  %1074 = vmatpush.bf16.msrb.mxu0 %v1887_v42  ;;  %v324_v34 = vld [vmem:[%s2035_s21 + $0x130] sm:$0xff]  ;;  %v414_v36 = vpack.c.bf16 %v323_v32, %v316_v31  ;;  %v329_v42 = vld [vmem:[%s2035_s21 + $0x158] sm:$0xff] }
  0x3a   : > { %v415_v37 = vpack.c.bf16 %v324_v34, %v317_v33 }
  0x3b   : > { %898 = vmatmul.bf16.gmra.mxu1 %v419_v45  ;;  %908 = vmatmul.bf16.gmra.mxu2 %v433_v46  ;;  %v337_v45 = vld [vmem:[%s2035_s21 + $0x198] sm:$0xff]  ;;  %v331_v46 = vld [vmem:[%s2035_s21 + $0x168] sm:$0xff] }
  0x3c   : > { %977 = vmatpush.bf16.msrb.mxu2 %v1870_v39  ;;  %928 = vmatpush.bf16.msrb.mxu1 %v1862_v43  ;;  %v325_v39 = vld [vmem:[%s2035_s21 + $0x138] sm:$0xff]  ;;  %v336_v43 = vld [vmem:[%s2035_s21 + $0x190] sm:$0xff] }
  0x3d   : > { %1026 = vmatpush.bf16.msrb.mxu3 %v1878_v44  ;;  %1075 = vmatpush.bf16.msrb.mxu0 %v1886_v51  ;;  %v416_v40 = vpack.c.bf16 %v325_v39, %v318_v38  ;;  %v330_v44 = vld [vmem:[%s2035_s21 + $0x160] sm:$0xff]  ;;  %v420_v48 = vpack.c.bf16 %v336_v43, %v329_v42  ;;  %v332_v51 = vld [vmem:[%s2035_s21 + $0x170] sm:$0xff]  ;;  %v393_v39 = vld [vmem:[%s2035_s21 + $0x358] sm:$0xff] }
  0x3e   : > { %918 = vmatmul.bf16.gmra.mxu3 %v447_v47  ;;  %888 = vmatmul.bf16.gmra.mxu0 %v405_v54  ;;  %v338_v47 = vld [vmem:[%s2035_s21 + $0x1a0] sm:$0xff]  ;;  %v421_v49 = vpack.c.bf16 %v337_v45, %v330_v44  ;;  %v1893_v54 = vld [vmem:[%s2465_s1 + $0x150] sm:$0xff] }
  0x3f   : > { %v386_v38 = vld [vmem:[%s2035_s21 + $0x320] sm:$0xff] }
  0x40   : > { %978 = vmatpush.bf16.msrb.mxu2 %v1869_v50  ;;  %929 = vmatpush.bf16.msrb.mxu1 %v1861_v52  ;;  %v422_v50 = vpack.c.bf16 %v338_v47, %v331_v46  ;;  %v339_v52 = vld [vmem:[%s2035_s21 + $0x1a8] sm:$0xff]  ;;  %v449_v46 = vpack.c.bf16 %v393_v39, %v386_v38  ;;  %v320_v38 = vld [vmem:[%s2035_s21 + $0x110] sm:$0xff] }
  0x41   : > { %1027 = vmatpush.bf16.msrb.mxu3 %v1877_v53  ;;  %1076 = vmatpush.bf16.msrb.mxu0 %v1885_v56  ;;  %v423_v53 = vpack.c.bf16 %v339_v52, %v332_v51  ;;  %v350_v56 = vld [vmem:[%s2035_s21 + $0x200] sm:$0xff]  ;;  %v1907_v52 = vld [vmem:[%s2467_s3 + $0x38] sm:$0xff]  ;;  %v327_v39 = vld [vmem:[%s2035_s21 + $0x148] sm:$0xff] }
  0x44   : > { %979 = vmatpush.bf16.msrb.mxu2 %v1868_v55  ;;  %930 = vmatpush.bf16.msrb.mxu1 %v1860_v57  ;;  %v343_v55 = vld [vmem:[%s2035_s21 + $0x1c8] sm:$0xff]  ;;  %v344_v57 = vld [vmem:[%s2035_s21 + $0x1d0] sm:$0xff] }
  0x45   : > { %1028 = vmatpush.bf16.msrb.mxu3 %v1876_v58  ;;  %1077 = vmatpush.bf16.msrb.mxu0 %v1884_v60  ;;  %v351_v58 = vld [vmem:[%s2035_s21 + $0x208] sm:$0xff]  ;;  %v352_v60 = vld [vmem:[%s2035_s21 + $0x210] sm:$0xff] }
  0x48   : > { %980 = vmatpush.bf16.msrb.mxu2 %v1867_v59  ;;  %931 = vmatpush.bf16.msrb.mxu1 %v1859_v61  ;;  %v345_v59 = vld [vmem:[%s2035_s21 + $0x1d8] sm:$0xff]  ;;  %v427_v61 = vpack.c.bf16 %v350_v56, %v343_v55 }
  0x49   : > { %1029 = vmatpush.bf16.msrb.mxu3 %v1875_v62  ;;  %1078 = vmatpush.bf16.msrb.mxu0 %v1883_v7  ;;  %v428_v62 = vpack.c.bf16 %v351_v58, %v344_v57  ;;  %v429_v63 = vpack.c.bf16 %v352_v60, %v345_v59  ;;  %v365_v7 = vld [vmem:[%s2035_s21 + $0x278] sm:$0xff]  ;;  %v291_v59 = vld [vmem:[%s2035_s21 + $0x28] sm:$0xff]  ;;  %v298_v60 = vld [vmem:[%s2035_s21 + $0x60] sm:$0xff] }
  0x4a   : > { %v435_v11 = vpack.c.bf16 %v365_v7, %v358_v6  ;;  %v1906_v6 = vld [vmem:[%s2467_s3 + $0x30] sm:$0xff] }
  0x4b   : > { %932 = vmatmul.bf16.vlgmr.msrb.gmra.mxu1 %v399_v8  ;;  %981 = vmatmul.bf16.vlgmr.msrb.gmra.mxu2 %v400_v9  ;;  %v359_v8 = vld [vmem:[%s2035_s21 + $0x248] sm:$0xff]  ;;  %v366_v9 = vld [vmem:[%s2035_s21 + $0x280] sm:$0xff] }
  0x4c   : > { %1176 = vmatpush.bf16.msra.mxu2 %v1899_v0  ;;  %1120 = vmatpush.bf16.msra.mxu1 %v1898_v1  ;;  %v346_v0 = vld [vmem:[%s2035_s21 + $0x1e0] sm:$0xff]  ;;  %v353_v1 = vld [vmem:[%s2035_s21 + $0x218] sm:$0xff]  ;;  %v436_v12 = vpack.c.bf16 %v366_v9, %v359_v8 }
  0x4d   : > { %v430_v2 = vpack.c.bf16 %v353_v1, %v346_v0  ;;  %1310 = vmatpush.bf16.msra.mxu3 %v1907_v52 }
  0x4e   : > { %1030 = vmatmul.bf16.vlgmr.msrb.gmra.mxu3 %v401_v10  ;;  %1079 = vmatmul.bf16.vlgmr.msrb.gmra.mxu0 %v402_v14  ;;  %v434_v10 = vpack.c.bf16 %v364_v5, %v357_v4  ;;  %v367_v14 = vld [vmem:[%s2035_s21 + $0x288] sm:$0xff] }
  0x50   : > { %1121 = vmatpush.bf16.msra.mxu1 %v1897_v13  ;;  %v360_v13 = vld [vmem:[%s2035_s21 + $0x250] sm:$0xff] }
  0x51   : > { %1311 = vmatpush.bf16.msra.mxu3 %v1906_v6  ;;  %v1903_v6 = vld [vmem:[%s2467_s3 + $0x18] sm:$0xff] }
  0x54   : > { %1122 = vmatpush.bf16.msra.mxu1 %v1896_v15  ;;  %v437_v15 = vpack.c.bf16 %v367_v14, %v360_v13  ;;  %v312_v13 = vld [vmem:[%s2035_s21 + $0xd0] sm:$0xff]  ;;  %v306_v14 = vld [vmem:[%s2035_s21 + $0xa0] sm:$0xff] }
  0x58   : > { %1123 = vmatpush.bf16.msra.mxu1 %v1895_v28  ;;  %v381_v28 = vld [vmem:[%s2035_s21 + $0x2f8] sm:$0xff] }
  0x5b   : > { %937 = vmatmul.bf16.gmra.mxu1 %v406_v22  ;;  %986 = vmatmul.bf16.gmra.mxu2 %v407_v23  ;;  %v380_v22 = vld [vmem:[%s2035_s21 + $0x2f0] sm:$0xff]  ;;  %v441_v23 = vpack.c.bf16 %v378_v18, %v371_v17 }
  0x5c   : > { %1124 = vmatpush.bf16.msra.mxu1 %v1894_v41  ;;  %v443_v26 = vpack.c.bf16 %v380_v22, %v373_v21  ;;  %v394_v41 = vld [vmem:[%s2035_s21 + $0x360] sm:$0xff] }
  0x5e   : > { %1035 = vmatmul.bf16.gmra.mxu3 %v408_v24  ;;  %1084 = vmatmul.bf16.gmra.mxu0 %v409_v27  ;;  %v442_v24 = vpack.c.bf16 %v379_v20, %v372_v19  ;;  %v374_v27 = vld [vmem:[%s2035_s21 + $0x2c0] sm:$0xff] }
  0x5f   : > { %v444_v29 = vpack.c.bf16 %v381_v28, %v374_v27 }
  0x60   : > { %1125 = vmatpush.bf16.msra.mxu1 %v1893_v54 }
  0x64   : > { %1126 = vmatpush.bf16.msra.mxu1 %v1892_v3 }
  0x68   : > { %1127 = vmatpush.bf16.msra.mxu1 %v1891_v16 }
  0x6b   : > { %942 = vmatmul.bf16.gmra.mxu1 %v413_v35  ;;  %991 = vmatmul.bf16.gmra.mxu2 %v414_v36  ;;  %v385_v36 = vld [vmem:[%s2035_s21 + $0x318] sm:$0xff] }
  0x6e   : > { %1040 = vmatmul.bf16.gmra.mxu3 %v415_v37  ;;  %1089 = vmatmul.bf16.gmra.mxu0 %v416_v40  ;;  %v392_v37 = vld [vmem:[%s2035_s21 + $0x350] sm:$0xff]  ;;  %v387_v40 = vld [vmem:[%s2035_s21 + $0x328] sm:$0xff] }
  0x6f   : > { %v448_v45 = vpack.c.bf16 %v392_v37, %v385_v36  ;;  %v319_v36 = vld [vmem:[%s2035_s21 + $0x108] sm:$0xff]  ;;  %v326_v37 = vld [vmem:[%s2035_s21 + $0x140] sm:$0xff] }
  0x7b   : > { %947 = vmatmul.bf16.gmra.mxu1 %v420_v48  ;;  %996 = vmatmul.bf16.gmra.mxu2 %v421_v49  ;;  %v450_v48 = vpack.c.bf16 %v394_v41, %v387_v40  ;;  %v388_v49 = vld [vmem:[%s2035_s21 + $0x330] sm:$0xff] }
  0x7e   : > { %1045 = vmatmul.bf16.gmra.mxu3 %v422_v50  ;;  %1094 = vmatmul.bf16.gmra.mxu0 %v423_v53  ;;  %v395_v50 = vld [vmem:[%s2035_s21 + $0x368] sm:$0xff] }
  0x7f   : > { %v451_v51 = vpack.c.bf16 %v395_v50, %v388_v49 }
  0x8b   : > { %952 = vmatmul.bf16.gmra.mxu1 %v427_v61  ;;  %1001 = vmatmul.bf16.gmra.mxu2 %v428_v62  ;;  %v292_v61 = vld [vmem:[%s2035_s21 + $0x30] sm:$0xff]  ;;  %v299_v62 = vld [vmem:[%s2035_s21 + $0x68] sm:$0xff] }
  0x8c   : > { %v404_v3 = vpack.c.bf16 %v299_v62, %v292_v61  ;;  %v334_v61 = vld [vmem:[%s2035_s21 + $0x180] sm:$0xff]  ;;  %v341_v62 = vld [vmem:[%s2035_s21 + $0x1b8] sm:$0xff] }
  0x8e   : > { %1050 = vmatmul.bf16.gmra.mxu3 %v429_v63  ;;  %1099 = vmatmul.bf16.gmra.mxu0 %v430_v2  ;;  %v403_v2 = vpack.c.bf16 %v298_v60, %v291_v59  ;;  %v333_v59 = vld [vmem:[%s2035_s21 + $0x178] sm:$0xff]  ;;  %v340_v60 = vld [vmem:[%s2035_s21 + $0x1b0] sm:$0xff] }
  0x9b   : > { %957 = vmatmul.bf16.gmra.mxu1 %v434_v10  ;;  %1006 = vmatmul.bf16.gmra.mxu2 %v435_v11 }
  0x9e   : > { %1055 = vmatmul.bf16.gmra.mxu3 %v436_v12  ;;  %1104 = vmatmul.bf16.gmra.mxu0 %v437_v15  ;;  %v305_v12 = vld [vmem:[%s2035_s21 + $0x98] sm:$0xff] }
  0x9f   : > { %v313_v15 = vld [vmem:[%s2035_s21 + $0xd8] sm:$0xff]  ;;  %v410_v21 = vpack.c.bf16 %v312_v13, %v305_v12  ;;  %v347_v12 = vld [vmem:[%s2035_s21 + $0x1e8] sm:$0xff]  ;;  %v354_v13 = vld [vmem:[%s2035_s21 + $0x220] sm:$0xff] }
  0xa0   : > { %v411_v22 = vpack.c.bf16 %v313_v15, %v306_v14  ;;  %v348_v14 = vld [vmem:[%s2035_s21 + $0x1f0] sm:$0xff]  ;;  %v355_v15 = vld [vmem:[%s2035_s21 + $0x228] sm:$0xff] }
  0xa8   : > { %v2233_v25 = vpop.f32.mrf.mxu1 }
  0xab   : > { %962 = vmatmul.bf16.gmra.mxu1 %v441_v23  ;;  %1011 = vmatmul.bf16.gmra.mxu2 %v442_v24  ;;  %v884_v58 = vpop.f32.mrf.mxu0 }
  0xac   : > { %v885_v0 = vadd.f32 %v2240_v30, %v884_v58 }
  0xae   : > { %1060 = vmatmul.bf16.gmra.mxu3 %v443_v26  ;;  %v904_v31 = vpop.f32.mrf.mxu2  ;;  %1109 = vmatmul.bf16.gmra.mxu0 %v444_v29  ;;  %v1905_v26 = vld [vmem:[%s2467_s3 + $0x28] sm:$0xff] }
  0xaf   : > { %v2243_v32 = vadd.f32 %v2240_v30, %v904_v31  ;;  %1312 = vmatpush.bf16.msra.mxu3 %v1905_v26 }
  0xb0   : > { %v2245_v34 = vpop.f32.mrf.mxu1 }
  0xb1   : > { %v914_v33 = vpop.f32.mrf.mxu3 }
  0xb2   : > { %v2248_v35 = vadd.f32 %v2240_v30, %v914_v33 }
  0xb3   : > { %v886_v7 = vpop.f32.mrf.mxu0 }
  0xb4   : > { %v887_v11 = vadd.f32 %v2240_v30, %v886_v7 }
  0xb6   : > { %v906_v42 = vpop.f32.mrf.mxu2 }
  0xb7   : > { %v2257_v43 = vadd.f32 %v2240_v30, %v906_v42  ;;  %v895_v42 = vadd.f32 %v2240_v30, %v2233_v25  ;;  %v897_v25 = vadd.f32 %v2240_v30, %v2245_v34  ;;  %v425_v34 = vpack.c.bf16 %v341_v62, %v334_v61 }
  0xb8   : > { %v2261_v47 = vpop.f32.mrf.mxu1 }
  0xb9   : > { %v2259_v44 = vpop.f32.mrf.mxu3 }
  0xbb   : > { %967 = vmatmul.bf16.gmra.mxu1 %v448_v45  ;;  %1016 = vmatmul.bf16.gmra.mxu2 %v449_v46  ;;  %v889_v17 = vpop.f32.mrf.mxu0  ;;  %v417_v46 = vpack.c.bf16 %v326_v37, %v319_v36  ;;  %v369_v36 = vld [vmem:[%s2035_s21 + $0x298] sm:$0xff] }
  0xbc   : > { %v890_v19 = vadd.f32 %v2240_v30, %v889_v17 }
  0xbe   : > { %1065 = vmatmul.bf16.gmra.mxu3 %v450_v48  ;;  %v909_v53 = vpop.f32.mrf.mxu2  ;;  %1114 = vmatmul.bf16.gmra.mxu0 %v451_v51  ;;  %v418_v48 = vpack.c.bf16 %v327_v39, %v320_v38  ;;  %v1904_v51 = vld [vmem:[%s2467_s3 + $0x20] sm:$0xff] }
  0xbf   : > { %v2269_v54 = vadd.f32 %v2240_v30, %v909_v53  ;;  %1313 = vmatpush.bf16.msra.mxu3 %v1904_v51  ;;  %v375_v51 = vld [vmem:[%s2035_s21 + $0x2c8] sm:$0xff] }
  0xc0   : > { %v2271_v56 = vpop.f32.mrf.mxu1 }
  0xc1   : > { %v919_v55 = vpop.f32.mrf.mxu3 }
  0xc2   : > { %v2274_v57 = vadd.f32 %v2240_v30, %v919_v55 }
  0xc3   : > { %v891_v29 = vpop.f32.mrf.mxu0  ;;  %1314 = vmatpush.bf16.msra.mxu3 %v1903_v6 }
  0xc4   : > { %v892_v33 = vadd.f32 %v2240_v30, %v891_v29  ;;  %v361_v29 = vld [vmem:[%s2035_s21 + $0x258] sm:$0xff] }
  0xc6   : > { %v911_v63 = vpop.f32.mrf.mxu2 }
  0xc7   : > { %v2282_v1 = vadd.f32 %v2240_v30, %v911_v63 }
  0xc8   : > { %v933_v4 = vpop.f32.mrf.mxu1 }
  0xc9   : > { %v934_v5 = vadd.f32 %v933_v4, %v885_v0  ;;  %v900_v0 = vadd.f32 %v2240_v30, %v2261_v47  ;;  %v902_v47 = vadd.f32 %v2240_v30, %v2271_v56 }
  0xcb   : > { %1128 = vmatmul.bf16.vlgmr.msra.gmra.mxu1 %v403_v2  ;;  %1777 = vmatmul.msk.bf16.vlgmr.msra.gmra.mxu2 %vm850_vm0, %v404_v3  ;;  %v424_v3 = vpack.c.bf16 %v340_v60, %v333_v59 }
  0xce   : > { %v982_v8 = vpop.f32.mrf.mxu2 }
  0xcf   : > { %v2288_v9 = vadd.f32 %v982_v8, %v934_v5 }
  0xd0   : > { %v935_v10 = vpop.f32.mrf.mxu1 }
  0xd1   : > { %v936_v16 = vadd.f32 %v935_v10, %v887_v11 }
  0xd6   : > { %v984_v18 = vpop.f32.mrf.mxu2 }
  0xd7   : > { %v2296_v20 = vadd.f32 %v984_v18, %v936_v16  ;;  %v431_v18 = vpack.c.bf16 %v354_v13, %v347_v12  ;;  %v397_v12 = vld [vmem:[%s2035_s21 + $0x378] sm:$0xff] }
  0xd8   : > { %v938_v23 = vpop.f32.mrf.mxu1 }
  0xd9   : > { %v939_v24 = vadd.f32 %v938_v23, %v890_v19  ;;  %v432_v19 = vpack.c.bf16 %v355_v15, %v348_v14 }
  0xdb   : > { %1133 = vmatmul.bf16.gmra.mxu1 %v410_v21  ;;  %1778 = vmatmul.msk.bf16.gmra.mxu2 %vm850_vm0, %v411_v22  ;;  %v1902_v22 = vld [vmem:[%s2467_s3 + $0x10] sm:$0xff] }
  0xdc   : > { %1315 = vmatpush.bf16.msra.mxu3 %v1902_v22 }
  0xde   : > { %v987_v27 = vpop.f32.mrf.mxu2 }
  0xdf   : > { %v2302_v28 = vadd.f32 %v987_v27, %v939_v24 }
  0xe0   : > { %v940_v31 = vpop.f32.mrf.mxu1 }
  0xe1   : > { %v941_v40 = vadd.f32 %v940_v31, %v892_v33  ;;  %v368_v31 = vld [vmem:[%s2035_s21 + $0x290] sm:$0xff]  ;;  %v362_v33 = vld [vmem:[%s2035_s21 + $0x260] sm:$0xff] }
  0xe2   : > { %v438_v38 = vpack.c.bf16 %v368_v31, %v361_v29  ;;  %v439_v39 = vpack.c.bf16 %v369_v36, %v362_v33 }
  0xe6   : > { %v989_v41 = vpop.f32.mrf.mxu2 }
  0xe7   : > { %v2311_v45 = vadd.f32 %v989_v41, %v941_v40 }
  0xe8   : > { %v943_v49 = vpop.f32.mrf.mxu1 }
  0xe9   : > { %v944_v50 = vadd.f32 %v943_v49, %v895_v42  ;;  %v921_v42 = vpop.f32.mrf.mxu3 }
  0xea   : > { %v922_v22 = vadd.f32 %v2240_v30, %v921_v42 }
  0xeb   : > { %1138 = vmatmul.bf16.gmra.mxu1 %v417_v46  ;;  %1779 = vmatmul.msk.bf16.gmra.mxu2 %vm850_vm0, %v418_v48 }
  0xee   : > { %v992_v52 = vpop.f32.mrf.mxu2 }
  0xef   : > { %v2319_v53 = vadd.f32 %v992_v52, %v944_v50  ;;  %v382_v52 = vld [vmem:[%s2035_s21 + $0x300] sm:$0xff] }
  0xf0   : > { %v945_v55 = vpop.f32.mrf.mxu1  ;;  %v445_v60 = vpack.c.bf16 %v382_v52, %v375_v51 }
  0xf1   : > { %v946_v58 = vadd.f32 %v945_v55, %v897_v25  ;;  %v376_v25 = vld [vmem:[%s2035_s21 + $0x2d0] sm:$0xff]  ;;  %v383_v55 = vld [vmem:[%s2035_s21 + $0x308] sm:$0xff] }
  0xf2   : > { %v446_v61 = vpack.c.bf16 %v383_v55, %v376_v25 }
  0xf6   : > { %v994_v63 = vpop.f32.mrf.mxu2 }
  0xf7   : > { %v2327_v2 = vadd.f32 %v994_v63, %v946_v58 }
  0xf8   : > { %v948_v4 = vpop.f32.mrf.mxu1 }
  0xf9   : > { %v949_v5 = vadd.f32 %v948_v4, %v900_v0  ;;  %v1080_v0 = vpop.f32.mrf.mxu0 }
  0xfb   : > { %1143 = vmatmul.bf16.gmra.mxu1 %v424_v3  ;;  %1780 = vmatmul.msk.bf16.gmra.mxu2 %vm850_vm0, %v425_v34  ;;  %v917_v34 = vadd.f32 %v2240_v30, %v2259_v44  ;;  %v1915_v30 = vld [vmem:[%s2469_s5 + $0x38] sm:$0xff] }
  0xfc   : > { %1451 = vmatpush.bf16.msra.mxu0 %v1915_v30 }
  0xfe   : > { %v997_v7 = vpop.f32.mrf.mxu2 }
  0xff   : > { %v2335_v8 = vadd.f32 %v997_v7, %v949_v5 }
 0x100   : > { %v950_v10 = vpop.f32.mrf.mxu1 }
 0x101   : > { %v951_v11 = vadd.f32 %v950_v10, %v902_v47  ;;  %v1082_v47 = vpop.f32.mrf.mxu0  ;;  %v396_v10 = vld [vmem:[%s2035_s21 + $0x370] sm:$0xff] }
 0x106   : > { %v999_v16 = vpop.f32.mrf.mxu2 }
 0x107   : > { %v2341_v17 = vadd.f32 %v999_v16, %v951_v11  ;;  %v390_v11 = vld [vmem:[%s2035_s21 + $0x340] sm:$0xff] }
 0x108   : > { %v953_v21 = vpop.f32.mrf.mxu1  ;;  %v453_v16 = vpack.c.bf16 %v397_v12, %v390_v11 }
 0x109   : > { %v954_v56 = vadd.f32 %v953_v21, %v2243_v32  ;;  %v1085_v44 = vpop.f32.mrf.mxu0 }
 0x10b   : > { %1148 = vmatmul.bf16.gmra.mxu1 %v431_v18  ;;  %1781 = vmatmul.msk.bf16.gmra.mxu2 %vm850_vm0, %v432_v19 }
 0x10e   : > { %v1002_v23 = vpop.f32.mrf.mxu2 }
 0x10f   : > { %v2348_v24 = vadd.f32 %v1002_v23, %v954_v56 }
 0x110   : > { %v955_v26 = vpop.f32.mrf.mxu1 }
 0x111   : > { %v956_v27 = vadd.f32 %v955_v26, %v2257_v43  ;;  %v1901_v43 = vld [vmem:[%s2467_s3 + $0x8] sm:$0xff]  ;;  %v1087_v36 = vpop.f32.mrf.mxu0 }
 0x112   : > { %1316 = vmatpush.bf16.msra.mxu3 %v1901_v43 }
 0x116   : > { %v1004_v32 = vpop.f32.mrf.mxu2 }
 0x117   : > { %v2355_v37 = vadd.f32 %v1004_v32, %v956_v27 }
 0x118   : > { %v958_v40 = vpop.f32.mrf.mxu1 }
 0x119   : > { %v959_v41 = vadd.f32 %v958_v40, %v2269_v54  ;;  %v1031_v54 = vpop.f32.mrf.mxu3  ;;  %v1090_v42 = vpop.f32.mrf.mxu0 }
 0x11b   : > { %1153 = vmatmul.bf16.gmra.mxu1 %v438_v38  ;;  %1782 = vmatmul.msk.bf16.gmra.mxu2 %vm850_vm0, %v439_v39 }
 0x11e   : > { %v1007_v46 = vpop.f32.mrf.mxu2 }
 0x11f   : > { %v2362_v48 = vadd.f32 %v1007_v46, %v959_v41 }
 0x120   : > { %v960_v49 = vpop.f32.mrf.mxu1 }
 0x121   : > { %v961_v50 = vadd.f32 %v960_v49, %v2282_v1  ;;  %v1900_v1 = vld [vmem:[%s2467_s3] sm:$0xff]  ;;  %v1033_v5 = vpop.f32.mrf.mxu3 }
 0x122   : > { %1317 = vmatpush.bf16.msra.mxu3 %v1900_v1  ;;  %v1034_v40 = vadd.f32 %v1033_v5, %v2296_v20  ;;  %v1092_v20 = vpop.f32.mrf.mxu0 }
 0x124   : > { %v1083_v46 = vadd.f32 %v1082_v47, %v1034_v40 }
 0x126   : > { %v1009_v58 = vpop.f32.mrf.mxu2 }
 0x127   : > { %v2369_v59 = vadd.f32 %v1009_v58, %v961_v50 }
 0x128   : > { %v963_v62 = vpop.f32.mrf.mxu1 }
 0x129   : > { %v964_v63 = vadd.f32 %v963_v62, %v2248_v35  ;;  %v389_v35 = vld [vmem:[%s2035_s21 + $0x338] sm:$0xff]  ;;  %v1036_v21 = vpop.f32.mrf.mxu3 }
 0x12a   : > { %v452_v15 = vpack.c.bf16 %v396_v10, %v389_v35  ;;  %v1095_v47 = vpop.f32.mrf.mxu0 }
 0x12b   : > { %1158 = vmatmul.bf16.gmra.mxu1 %v445_v60  ;;  %1783 = vmatmul.msk.bf16.gmra.mxu2 %vm850_vm0, %v446_v61  ;;  %v1037_v61 = vadd.f32 %v1036_v21, %v2302_v28 }
 0x12d   : > { %v1086_v1 = vadd.f32 %v1085_v44, %v1037_v61 }
 0x12e   : > { %v1012_v3 = vpop.f32.mrf.mxu2 }
 0x12f   : > { %v2378_v4 = vadd.f32 %v1012_v3, %v964_v63  ;;  %v1914_v3 = vld [vmem:[%s2469_s5 + $0x30] sm:$0xff] }
 0x130   : > { %v965_v6 = vpop.f32.mrf.mxu1  ;;  %1452 = vmatpush.bf16.msra.mxu0 %v1914_v3 }
 0x131   : > { %v966_v7 = vadd.f32 %v965_v6, %v917_v34  ;;  %v1038_v29 = vpop.f32.mrf.mxu3 }
 0x132   : > { %v1039_v63 = vadd.f32 %v1038_v29, %v2311_v45  ;;  %v1097_v21 = vpop.f32.mrf.mxu0 }
 0x134   : > { %v1088_v5 = vadd.f32 %v1087_v36, %v1039_v63 }
 0x136   : > { %v1014_v13 = vpop.f32.mrf.mxu2 }
 0x137   : > { %v2384_v14 = vadd.f32 %v1014_v13, %v966_v7 }
 0x138   : > { %v968_v18 = vpop.f32.mrf.mxu1 }
 0x139   : > { %v969_v19 = vadd.f32 %v968_v18, %v2274_v57  ;;  %v1032_v57 = vadd.f32 %v1031_v54, %v2288_v9  ;;  %v1041_v38 = vpop.f32.mrf.mxu3 }
 0x13a   : > { %v1100_v40 = vpop.f32.mrf.mxu0 }
 0x13b   : > { %1163 = vmatmul.bf16.gmra.mxu1 %v452_v15  ;;  %1784 = vmatmul.msk.bf16.gmra.mxu2 %vm850_vm0, %v453_v16  ;;  %v1081_v43 = vadd.f32 %v1080_v0, %v1032_v57  ;;  %v1042_v16 = vadd.f32 %v1041_v38, %v2319_v53 }
 0x13e   : > { %v1017_v56 = vpop.f32.mrf.mxu2 }
 0x13f   : > { %v2389_v23 = vadd.f32 %v1017_v56, %v969_v19  ;;  %v1091_v56 = vadd.f32 %v1090_v42, %v1042_v16 }
 0x140   : > { %v970_v26 = vpop.f32.mrf.mxu1 }
 0x141   : > { %v971_v27 = vadd.f32 %v970_v26, %v922_v22  ;;  %v1043_v55 = vpop.f32.mrf.mxu3  ;;  %v1913_v22 = vld [vmem:[%s2469_s5 + $0x28] sm:$0xff] }
 0x142   : > { %v1044_v19 = vadd.f32 %v1043_v55, %v2327_v2  ;;  %1453 = vmatpush.bf16.msra.mxu0 %v1913_v22 }
 0x144   : > { %v1093_v26 = vadd.f32 %v1092_v20, %v1044_v19 }
 0x146   : > { %v1019_v31 = vpop.f32.mrf.mxu2 }
 0x147   : > { %v2391_v33 = vadd.f32 %v1019_v31, %v971_v27 }
 0x148   : > { %v1129_v32 = vpop.f32.mrf.mxu1 }
 0x149   : > { %v1130_v49 = vadd.f32 %v1129_v32, %v1081_v43  ;;  %v1046_v34 = vpop.f32.mrf.mxu3 }
 0x14e   : > { %v1178_v39 = vpop.f32.mrf.mxu2 }
 0x14f   : > { %v1179_v50 = vadd.f32 %v1178_v39, %v1130_v49 }
 0x150   : > { %v1131_v41 = vpop.f32.mrf.mxu1 }
 0x151   : > { %v1132_v51 = vadd.f32 %v1131_v41, %v1083_v46  ;;  %v1218_v54 = vmax.f32 %v1179_v50, 0.0  ;;  %v1048_v45 = vpop.f32.mrf.mxu3  ;;  %v1047_v41 = vadd.f32 %v1046_v34, %v2335_v8  ;;  %v1912_v50 = vld [vmem:[%s2469_s5 + $0x20] sm:$0xff] }
 0x152   : > { %v1049_v30 = vadd.f32 %v1048_v45, %v2341_v17  ;;  %1454 = vmatpush.bf16.msra.mxu0 %v1912_v50 }
 0x153   : > { %v1096_v49 = vadd.f32 %v1095_v47, %v1047_v41 }
 0x156   : > { %v1180_v52 = vpop.f32.mrf.mxu2 }
 0x157   : > { %v1181_v25 = vadd.f32 %v1180_v52, %v1132_v51  ;;  %v1098_v51 = vadd.f32 %v1097_v21, %v1049_v30  ;;  %v1908_v30 = vld [vmem:[%s2469_s5] sm:$0xff] }
 0x158   : > { %v1134_v9 = vpop.f32.mrf.mxu1 }
 0x159   : > { %v1219_v58 = vmax.f32 %v1181_v25, 0.0  ;;  %v1135_v6 = vadd.f32 %v1134_v9, %v1086_v1  ;;  %v1051_v36 = vpop.f32.mrf.mxu3  ;;  %v1102_v25 = vpop.f32.mrf.mxu0 }
 0x15b   : > { %v1234_v60 = vpack.c.bf16 %v1219_v58, %v1218_v54 }
 0x15d   : > { %1318 = vmatmul.bf16.vlgmr.msra.gmra.mxu3 %v1234_v60 }
 0x15e   : > { %v1183_v62 = vpop.f32.mrf.mxu2 }
 0x15f   : > { %v1184_v7 = vadd.f32 %v1183_v62, %v1135_v6  ;;  %v1052_v62 = vadd.f32 %v1051_v36, %v2348_v24 }
 0x160   : > { %v1136_v0 = vpop.f32.mrf.mxu1 }
 0x161   : > { %v1137_v35 = vadd.f32 %v1136_v0, %v1088_v5  ;;  %v1220_v12 = vmax.f32 %v1184_v7, 0.0  ;;  %v1053_v42 = vpop.f32.mrf.mxu3  ;;  %v1105_v63 = vpop.f32.mrf.mxu0  ;;  %v1101_v34 = vadd.f32 %v1100_v40, %v1052_v62  ;;  %v1911_v5 = vld [vmem:[%s2469_s5 + $0x18] sm:$0xff] }
 0x162   : > { %v1054_v1 = vadd.f32 %v1053_v42, %v2355_v37  ;;  %1455 = vmatpush.bf16.msra.mxu0 %v1911_v5 }
 0x164   : > { %v1103_v6 = vadd.f32 %v1102_v25, %v1054_v1 }
 0x166   : > { %v1185_v10 = vpop.f32.mrf.mxu2 }
 0x167   : > { %v1186_v11 = vadd.f32 %v1185_v10, %v1137_v35 }
 0x168   : > { %v1139_v28 = vpop.f32.mrf.mxu1 }
 0x169   : > { %v1221_v13 = vmax.f32 %v1186_v11, 0.0  ;;  %v1140_v27 = vadd.f32 %v1139_v28, %v1091_v56  ;;  %v1056_v61 = vpop.f32.mrf.mxu3  ;;  %v1107_v24 = vpop.f32.mrf.mxu0  ;;  %v1910_v56 = vld [vmem:[%s2469_s5 + $0x10] sm:$0xff] }
 0x16a   : > { %v1057_v37 = vadd.f32 %v1056_v61, %v2362_v48  ;;  %1456 = vmatpush.bf16.msra.mxu0 %v1910_v56 }
 0x16b   : > { %v1235_v15 = vpack.c.bf16 %v1221_v13, %v1220_v12 }
 0x16d   : > { %1323 = vmatmul.bf16.gmra.mxu3 %v1235_v15 }
 0x16e   : > { %v1188_v18 = vpop.f32.mrf.mxu2 }
 0x16f   : > { %v1189_v29 = vadd.f32 %v1188_v18, %v1140_v27 }
 0x170   : > { %v1141_v44 = vpop.f32.mrf.mxu1 }
 0x171   : > { %v1142_v31 = vadd.f32 %v1141_v44, %v1093_v26  ;;  %v1222_v38 = vmax.f32 %v1189_v29, 0.0  ;;  %v1058_v35 = vpop.f32.mrf.mxu3  ;;  %v1106_v44 = vadd.f32 %v1105_v63, %v1057_v37  ;;  %v1110_v22 = vpop.f32.mrf.mxu0 }
 0x172   : > { %v1059_v19 = vadd.f32 %v1058_v35, %v2369_v59 }
 0x174   : > { %v1108_v26 = vadd.f32 %v1107_v24, %v1059_v19 }
 0x176   : > { %v1190_v32 = vpop.f32.mrf.mxu2 }
 0x177   : > { %v1191_v57 = vadd.f32 %v1190_v32, %v1142_v31 }
 0x178   : > { %v1144_v53 = vpop.f32.mrf.mxu1 }
 0x179   : > { %v1223_v39 = vmax.f32 %v1191_v57, 0.0  ;;  %v1145_v52 = vadd.f32 %v1144_v53, %v1096_v49  ;;  %v1061_v16 = vpop.f32.mrf.mxu3  ;;  %v1112_v59 = vpop.f32.mrf.mxu0 }
 0x17a   : > { %v1062_v40 = vadd.f32 %v1061_v16, %v2378_v4 }
 0x17b   : > { %v1236_v2 = vpack.c.bf16 %v1223_v39, %v1222_v38 }
 0x17d   : > { %1328 = vmatmul.bf16.gmra.mxu3 %v1236_v2  ;;  %v1909_v2 = vld [vmem:[%s2469_s5 + $0x8] sm:$0xff] }
 0x17e   : > { %v1193_v43 = vpop.f32.mrf.mxu2  ;;  %1457 = vmatpush.bf16.msra.mxu0 %v1909_v2 }
 0x17f   : > { %v1194_v55 = vadd.f32 %v1193_v43, %v1145_v52 }
 0x180   : > { %v1146_v46 = vpop.f32.mrf.mxu1 }
 0x181   : > { %v1147_v9 = vadd.f32 %v1146_v46, %v1098_v51  ;;  %v1224_v60 = vmax.f32 %v1194_v55, 0.0  ;;  %v1063_v48 = vpop.f32.mrf.mxu3  ;;  %v1111_v46 = vadd.f32 %v1110_v22, %v1062_v40  ;;  %v1115_v25 = vpop.f32.mrf.mxu0 }
 0x182   : > { %v1064_v43 = vadd.f32 %v1063_v48, %v2384_v14  ;;  %1458 = vmatpush.bf16.msra.mxu0 %v1908_v30 }
 0x184   : > { %v1113_v50 = vadd.f32 %v1112_v59, %v1064_v43 }
 0x186   : > { %v1195_v54 = vpop.f32.mrf.mxu2 }
 0x187   : > { %v1196_v58 = vadd.f32 %v1195_v54, %v1147_v9 }
 0x188   : > { %v1149_v8 = vpop.f32.mrf.mxu1 }
 0x189   : > { %v1225_v20 = vmax.f32 %v1196_v58, 0.0  ;;  %v1150_v7 = vadd.f32 %v1149_v8, %v1101_v34  ;;  %v1066_v49 = vpop.f32.mrf.mxu3  ;;  %v1117_v62 = vpop.f32.mrf.mxu0 }
 0x18b   : > { %v1237_v17 = vpack.c.bf16 %v1225_v20, %v1224_v60  ;;  %v1067_v20 = vadd.f32 %v1066_v49, %v2389_v23  ;;  %v1950_v23 = vld [vmem:[%s2468_s4] ss:$0 sm:$0xff] }
 0x18d   : > { %1333 = vmatmul.bf16.gmra.mxu3 %v1237_v17  ;;  %v1116_v63 = vadd.f32 %v1115_v25, %v1067_v20 }
 0x18e   : > { %v1198_v0 = vpop.f32.mrf.mxu2 }
 0x18f   : > { %v1199_v47 = vadd.f32 %v1198_v0, %v1150_v7 }
 0x190   : > { %v1151_v3 = vpop.f32.mrf.mxu1 }
 0x191   : > { %v1152_v10 = vadd.f32 %v1151_v3, %v1103_v6  ;;  %v1226_v13 = vmax.f32 %v1199_v47, 0.0  ;;  %v1068_v60 = vpop.f32.mrf.mxu3 }
 0x192   : > { %v1069_v17 = vadd.f32 %v1068_v60, %v2391_v33 }
 0x194   : > { %v1118_v1 = vadd.f32 %v1117_v62, %v1069_v17 }
 0x196   : > { %v1200_v11 = vpop.f32.mrf.mxu2 }
 0x197   : > { %v1201_v28 = vadd.f32 %v1200_v11, %v1152_v10 }
 0x198   : > { %v1154_v12 = vpop.f32.mrf.mxu1 }
 0x199   : > { %v1227_v15 = vmax.f32 %v1201_v28, 0.0  ;;  %v1155_v27 = vadd.f32 %v1154_v12, %v1106_v44 }
 0x19b   : > { %v1238_v45 = vpack.c.bf16 %v1227_v15, %v1226_v13 }
 0x19d   : > { %1338 = vmatmul.bf16.gmra.mxu3 %v1238_v45 }
 0x19e   : > { %v1203_v18 = vpop.f32.mrf.mxu2 }
 0x19f   : > { %v1204_v29 = vadd.f32 %v1203_v18, %v1155_v27 }
 0x1a0   : > { %v1156_v21 = vpop.f32.mrf.mxu1 }
 0x1a1   : > { %v1157_v31 = vadd.f32 %v1156_v21, %v1108_v26  ;;  %v1228_v53 = vmax.f32 %v1204_v29, 0.0 }
 0x1a6   : > { %v1205_v36 = vpop.f32.mrf.mxu2 }
 0x1a7   : > { %v1206_v32 = vadd.f32 %v1205_v36, %v1157_v31 }
 0x1a8   : > { %v1159_v57 = vpop.f32.mrf.mxu1 }
 0x1a9   : > { %v1229_v38 = vmax.f32 %v1206_v32, 0.0  ;;  %v1160_v51 = vadd.f32 %v1159_v57, %v1111_v46 }
 0x1ab   : > { %v1239_v39 = vpack.c.bf16 %v1229_v38, %v1228_v53 }
 0x1ad   : > { %1343 = vmatmul.bf16.gmra.mxu3 %v1239_v39 }
 0x1ae   : > { %v1208_v41 = vpop.f32.mrf.mxu2 }
 0x1af   : > { %v1209_v4 = vadd.f32 %v1208_v41, %v1160_v51 }
 0x1b0   : > { %v1161_v42 = vpop.f32.mrf.mxu1 }
 0x1b1   : > { %v1162_v52 = vadd.f32 %v1161_v42, %v1113_v50  ;;  %v1230_v58 = vmax.f32 %v1209_v4, 0.0 }
 0x1b6   : > { %v1210_v55 = vpop.f32.mrf.mxu2 }
 0x1b7   : > { %v1211_v9 = vadd.f32 %v1210_v55, %v1162_v52 }
 0x1b8   : > { %v1164_v54 = vpop.f32.mrf.mxu1 }
 0x1b9   : > { %v1231_v8 = vmax.f32 %v1211_v9, 0.0  ;;  %v1165_v3 = vadd.f32 %v1164_v54, %v1116_v63 }
 0x1bb   : > { %v1240_v14 = vpack.c.bf16 %v1231_v8, %v1230_v58 }
 0x1bd   : > { %1348 = vmatmul.bf16.gmra.mxu3 %v1240_v14 }
 0x1be   : > { %v1213_v61 = vpop.f32.mrf.mxu2 }
 0x1bf   : > { %v1214_v34 = vadd.f32 %v1213_v61, %v1165_v3 }
 0x1c0   : > { %v1166_v0 = vpop.f32.mrf.mxu1 }
 0x1c1   : > { %v1167_v5 = vadd.f32 %v1166_v0, %v1118_v1  ;;  %v1232_v35 = vmax.f32 %v1214_v34, 0.0  ;;  %v1951_v34 = vld [vmem:[%s2470_s6] ss:$0 sm:$0xff] }
 0x1c6   : > { %v1215_v6 = vpop.f32.mrf.mxu2 }
 0x1c7   : > { %v1216_v7 = vadd.f32 %v1215_v6, %v1167_v5 }
 0x1c9   : > { %v1233_v47 = vmax.f32 %v1216_v7, 0.0 }
 0x1cb   : > { %v1241_v10 = vpack.c.bf16 %v1233_v47, %v1232_v35 }
 0x1cd   : > { %1353 = vmatmul.bf16.gmra.mxu3 %v1241_v10 }
 0x1e0   : > { %v1319_v11 = vpop.f32.mrf.mxu3 }
 0x1e1   : > { %v1320_v28 = vadd.f32 %v1950_v23, %v1319_v11 }
 0x1e3   : > { %v1359_v12 = vmax.f32 %v1320_v28, 0.0 }
 0x1e8   : > { %v1321_v33 = vpop.f32.mrf.mxu3 }
 0x1e9   : > { %v1322_v24 = vadd.f32 %v1950_v23, %v1321_v33 }
 0x1eb   : > { %v1360_v13 = vmax.f32 %v1322_v24, 0.0 }
 0x1ed   : > { %v1375_v15 = vpack.c.bf16 %v1360_v13, %v1359_v12 }
 0x1ef   : > { %1459 = vmatmul.bf16.vlgmr.msra.gmra.mxu0 %v1375_v15 }
 0x1f0   : > { %v1324_v45 = vpop.f32.mrf.mxu3 }
 0x1f1   : > { %v1325_v37 = vadd.f32 %v1950_v23, %v1324_v45 }
 0x1f3   : > { %v1361_v19 = vmax.f32 %v1325_v37, 0.0 }
 0x1f8   : > { %v1326_v16 = vpop.f32.mrf.mxu3 }
 0x1f9   : > { %v1327_v18 = vadd.f32 %v1950_v23, %v1326_v16 }
 0x1fb   : > { %v1362_v21 = vmax.f32 %v1327_v18, 0.0 }
 0x1fd   : > { %v1376_v44 = vpack.c.bf16 %v1362_v21, %v1361_v19 }
 0x1ff   : > { %1464 = vmatmul.bf16.gmra.mxu0 %v1376_v44 }
 0x200   : > { %v1329_v56 = vpop.f32.mrf.mxu3 }
 0x201   : > { %v1330_v22 = vadd.f32 %v1950_v23, %v1329_v56 }
 0x203   : > { %v1363_v29 = vmax.f32 %v1330_v22, 0.0 }
 0x208   : > { %v1331_v26 = vpop.f32.mrf.mxu3 }
 0x209   : > { %v1332_v27 = vadd.f32 %v1950_v23, %v1331_v26 }
 0x20b   : > { %v1364_v31 = vmax.f32 %v1332_v27, 0.0 }
 0x20d   : > { %v1377_v36 = vpack.c.bf16 %v1364_v31, %v1363_v29 }
 0x20f   : > { %1469 = vmatmul.bf16.gmra.mxu0 %v1377_v36 }
 0x210   : > { %v1334_v32 = vpop.f32.mrf.mxu3 }
 0x211   : > { %v1335_v48 = vadd.f32 %v1950_v23, %v1334_v32 }
 0x213   : > { %v1365_v38 = vmax.f32 %v1335_v48, 0.0 }
 0x218   : > { %v1336_v57 = vpop.f32.mrf.mxu3 }
 0x219   : > { %v1337_v53 = vadd.f32 %v1950_v23, %v1336_v57 }
 0x21b   : > { %v1366_v39 = vmax.f32 %v1337_v53, 0.0 }
 0x21d   : > { %v1378_v59 = vpack.c.bf16 %v1366_v39, %v1365_v38 }
 0x21f   : > { %1474 = vmatmul.bf16.gmra.mxu0 %v1378_v59 }
 0x220   : > { %v1339_v40 = vpop.f32.mrf.mxu3 }
 0x221   : > { %v1340_v2 = vadd.f32 %v1950_v23, %v1339_v40 }
 0x223   : > { %v1367_v30 = vmax.f32 %v1340_v2, 0.0 }
 0x228   : > { %v1341_v41 = vpop.f32.mrf.mxu3 }
 0x229   : > { %v1342_v43 = vadd.f32 %v1950_v23, %v1341_v41 }
 0x22b   : > { %v1368_v42 = vmax.f32 %v1342_v43, 0.0 }
 0x22d   : > { %v1379_v46 = vpack.c.bf16 %v1368_v42, %v1367_v30 }
 0x22f   : > { %1479 = vmatmul.bf16.gmra.mxu0 %v1379_v46 }
 0x230   : > { %v1344_v49 = vpop.f32.mrf.mxu3 }
 0x231   : > { %v1345_v50 = vadd.f32 %v1950_v23, %v1344_v49 }
 0x233   : > { %v1369_v52 = vmax.f32 %v1345_v50, 0.0 }
 0x238   : > { %v1346_v51 = vpop.f32.mrf.mxu3 }
 0x239   : > { %v1347_v4 = vadd.f32 %v1950_v23, %v1346_v51 }
 0x23b   : > { %v1370_v25 = vmax.f32 %v1347_v4, 0.0 }
 0x23d   : > { %v1380_v55 = vpack.c.bf16 %v1370_v25, %v1369_v52 }
 0x23f   : > { %1484 = vmatmul.bf16.gmra.mxu0 %v1380_v55 }
 0x240   : > { %v1349_v9 = vpop.f32.mrf.mxu3 }
 0x241   : > { %v1350_v54 = vadd.f32 %v1950_v23, %v1349_v9 }
 0x243   : > { %v1371_v14 = vmax.f32 %v1350_v54, 0.0 }
 0x248   : > { %v1351_v58 = vpop.f32.mrf.mxu3 }
 0x249   : > { %v1352_v8 = vadd.f32 %v1950_v23, %v1351_v58 }
 0x24b   : > { %v1372_v60 = vmax.f32 %v1352_v8, 0.0 }
 0x24d   : > { %v1381_v20 = vpack.c.bf16 %v1372_v60, %v1371_v14 }
 0x24f   : > { %1489 = vmatmul.bf16.gmra.mxu0 %v1381_v20 }
 0x250   : > { %v1354_v61 = vpop.f32.mrf.mxu3 }
 0x251   : > { %v1355_v17 = vadd.f32 %v1950_v23, %v1354_v61 }
 0x253   : > { %v1373_v0 = vmax.f32 %v1355_v17, 0.0 }
 0x258   : > { %v1356_v62 = vpop.f32.mrf.mxu3 }
 0x259   : > { %v1357_v63 = vadd.f32 %v1950_v23, %v1356_v62 }
 0x25b   : > { %v1374_v1 = vmax.f32 %v1357_v63, 0.0 }
 0x25d   : > { %v1382_v3 = vpack.c.bf16 %v1374_v1, %v1373_v0 }
 0x25f   : > { %1494 = vmatmul.bf16.gmra.mxu0 %v1382_v3 }
 0x26c   : > { %v1460_v5 = vpop.f32.mrf.mxu0 }
 0x26d   : > { %v1461_v6 = vadd.f32 %v1951_v34, %v1460_v5 }
 0x26f   : > { %1500 = vst [vmem:[%s2443_s26] sm:$0xff] %v1461_v6 }
 0x274   : > { %v1462_v7 = vpop.f32.mrf.mxu0 }
 0x275   : > { %v1463_v35 = vadd.f32 %v1951_v34, %v1462_v7 }
 0x277   : > { %1501 = vst [vmem:[%s2443_s26 + $0x8] sm:$0xff] %v1463_v35 }
 0x27c   : > { %v1465_v47 = vpop.f32.mrf.mxu0 }
 0x27d   : > { %v1466_v10 = vadd.f32 %v1951_v34, %v1465_v47 }
 0x27f   : > { %1502 = vst [vmem:[%s2443_s26 + $0x10] sm:$0xff] %v1466_v10 }
 0x284   : > { %v1467_v11 = vpop.f32.mrf.mxu0 }
 0x285   : > { %v1468_v23 = vadd.f32 %v1951_v34, %v1467_v11 }
 0x287   : > { %1503 = vst [vmem:[%s2443_s26 + $0x18] sm:$0xff] %v1468_v23 }
 0x28c   : > { %v1470_v28 = vpop.f32.mrf.mxu0 }
 0x28d   : > { %v1471_v33 = vadd.f32 %v1951_v34, %v1470_v28 }
 0x28f   : > { %1504 = vst [vmem:[%s2443_s26 + $0x20] sm:$0xff] %v1471_v33 }
 0x294   : > { %v1472_v24 = vpop.f32.mrf.mxu0 }
 0x295   : > { %v1473_v12 = vadd.f32 %v1951_v34, %v1472_v24 }
 0x297   : > { %1505 = vst [vmem:[%s2443_s26 + $0x28] sm:$0xff] %v1473_v12 }
 0x29c   : > { %v1475_v13 = vpop.f32.mrf.mxu0 }
 0x29d   : > { %v1476_v15 = vadd.f32 %v1951_v34, %v1475_v13 }
 0x29f   : > { %1506 = vst [vmem:[%s2443_s26 + $0x30] sm:$0xff] %v1476_v15 }
 0x2a4   : > { %v1477_v45 = vpop.f32.mrf.mxu0 }
 0x2a5   : > { %v1478_v37 = vadd.f32 %v1951_v34, %v1477_v45 }
 0x2a7   : > { %1507 = vst [vmem:[%s2443_s26 + $0x38] sm:$0xff] %v1478_v37 }
 0x2ac   : > { %v1480_v16 = vpop.f32.mrf.mxu0 }
 0x2ad   : > { %v1481_v18 = vadd.f32 %v1951_v34, %v1480_v16 }
 0x2af   : > { %1508 = vst [vmem:[%s2443_s26 + $0x40] sm:$0xff] %v1481_v18 }
 0x2b4   : > { %v1482_v19 = vpop.f32.mrf.mxu0 }
 0x2b5   : > { %v1483_v21 = vadd.f32 %v1951_v34, %v1482_v19 }
 0x2b7   : > { %1509 = vst [vmem:[%s2443_s26 + $0x48] sm:$0xff] %v1483_v21 }
 0x2bc   : > { %v1485_v44 = vpop.f32.mrf.mxu0 }
 0x2bd   : > { %v1486_v56 = vadd.f32 %v1951_v34, %v1485_v44 }
 0x2bf   : > { %1510 = vst [vmem:[%s2443_s26 + $0x50] sm:$0xff] %v1486_v56 }
 0x2c4   : > { %v1487_v22 = vpop.f32.mrf.mxu0 }
 0x2c5   : > { %v1488_v26 = vadd.f32 %v1951_v34, %v1487_v22 }
 0x2c7   : > { %1511 = vst [vmem:[%s2443_s26 + $0x58] sm:$0xff] %v1488_v26 }
 0x2cc   : > { %v1490_v27 = vpop.f32.mrf.mxu0 }
 0x2cd   : > { %v1491_v29 = vadd.f32 %v1951_v34, %v1490_v27 }
 0x2cf   : > { %1512 = vst [vmem:[%s2443_s26 + $0x60] sm:$0xff] %v1491_v29 }
 0x2d4   : > { %v1492_v31 = vpop.f32.mrf.mxu0 }
 0x2d5   : > { %v1493_v36 = vadd.f32 %v1951_v34, %v1492_v31 }
 0x2d7   : > { %1513 = vst [vmem:[%s2443_s26 + $0x68] sm:$0xff] %v1493_v36 }
 0x2dc   : > { %v1495_v32 = vpop.f32.mrf.mxu0 }
 0x2dd   : > { %v1496_v48 = vadd.f32 %v1951_v34, %v1495_v32 }
 0x2df   : > { %1514 = vst [vmem:[%s2443_s26 + $0x70] sm:$0xff] %v1496_v48 }
 0x2e4   : > { %v1497_v57 = vpop.f32.mrf.mxu0 }
 0x2e5   : > { %v1498_v53 = vadd.f32 %v1951_v34, %v1497_v57 }
 0x2e7   : > { %1515 = vst [vmem:[%s2443_s26 + $0x78] sm:$0xff] %v1498_v53 }
 0x2e8 PF: > { %s17_s24 = sadd.s32 1, %s1958_s24  }
 0x2e9   : > { %p14_p4 = scmp.ge.s32.totalorder %s17_s24, 6  }
 0x2eb   :  { %16 = sbr.rel (!%p14_p4) target bundleno = 1 (0x1), region = 78 }

</bundles_post_ra>
